<compile_context>
chip_gen: v5e
topology: v5e:2x2
jax: 0.10.0
libtpu: 0.0.40
codegen_flags: <defaults>
</compile_context>

<pallas_src>
import functools

import jax
import jax.numpy as jnp
from jax import lax
from jax.experimental import pallas as pl
from jax.experimental.pallas import tpu as pltpu


_MXU_M = 256                   # MXU-native M on v6e/v7x; also a multiple of 128 (v5e)
_TARGET_TILE_BYTES = 4 << 20   # ~4 MiB input tiles reach ~HBM roofline for f32 streams


# ---------------------------------------------------------------------------
# Generation-aware VMEM budgeting
# ---------------------------------------------------------------------------

def _vmem_physical_bytes():
    """Physical VMEM per TensorCore, with a conservative fallback (v7x = 64 MiB)."""
    try:
        info = pltpu.get_tpu_info()
        cap = int(getattr(info, "vmem_capacity_bytes", 0) or 0)
        if cap > 0:
            return cap
    except Exception:
        pass
    return 64 << 20


def _vmem_budget_bytes():
    """Per-kernel buffer budget: half of physical, capped at 48 MiB.

    v5e/v6e (128 MiB physical) -> 48 MiB, v7x (64 MiB physical) -> 32 MiB.
    """
    return min(_vmem_physical_bytes() // 2, 48 << 20)


def _round_up(v, a):
    return ((v + a - 1) // a) * a


def _pick_batch_tile(rows, in_row_bytes, out_row_bytes, streaming_budget,
                     target_tile_bytes=_TARGET_TILE_BYTES):
    """Sublane/MXU-aligned batch tile for a double-buffered streaming kernel.

    Keeps 2x(in tile) + 2x(out tile) under `streaming_budget`, targets
    ~`target_tile_bytes` per input tile, and never emits a single grid step
    when the array is large enough to pipeline (>=4 blocks) or to shard across
    v7x's two TensorCores (>=2 blocks).
    """
    per_row_pipelined = 2 * (in_row_bytes + out_row_bytes)
    cap = max(8, streaming_budget // per_row_pipelined)
    tb = min(cap, max(8, target_tile_bytes // max(in_row_bytes, 1)))

    total_stream_bytes = rows * (in_row_bytes + out_row_bytes)
    if rows >= 32 and total_stream_bytes > (2 << 20):
        tb = min(tb, pl.cdiv(rows, 4))      # >= 4 pipeline stages
    elif rows >= 16:
        tb = min(tb, pl.cdiv(rows, 2))      # >= 2 blocks (v7x megacore)

    if tb >= rows:
        return rows                          # single full-extent block is legal
    for align in (_MXU_M, 128, 8):           # prefer MXU-native / lane / sublane
        if tb >= align:
            return (tb // align) * align
    return max(int(tb), 1)


def _pick_n_tile(f_pad, weight_budget):
    """Output-feature tile so the double-buffered (f_pad, tn) weight block fits."""
    tn_cap = weight_budget // (8 * f_pad)    # 2 buffers * 4 bytes
    if tn_cap >= f_pad:
        return f_pad
    return min(f_pad, max(128, (tn_cap // 128) * 128))


# ---------------------------------------------------------------------------
# Kernels
# ---------------------------------------------------------------------------

def _diag_kernel(x_ref, d_ref, o_ref):
    """force_diagonal path: pure elementwise select (VPU only, no MXU).

    out = x         where the feature is finite
        = diag(W)   where the feature is nan/inf (learned imputation)
    which equals y + m * diag(W) with y = x masked to 0 at missing entries.
    """
    x = x_ref[...]                                        # (TB, L) f32
    missing = jnp.logical_or(jnp.isnan(x), jnp.isinf(x))
    o_ref[...] = jnp.where(missing, d_ref[...], x)        # d broadcasts (1, L)


def _general_kernel(x_ref, wt_ref, o_ref, *, tn, use_bf16):
    """General path: out = y + m @ W.T, with W.T pre-materialized in HBM.

    x_ref:  (TB, Fp)   full feature width (needed for the contraction)
    wt_ref: (Fp, TN)   resident slice of W.T for this output-feature tile
    o_ref:  (TB, TN)
    """
    j = pl.program_id(1)
    x = x_ref[...]
    missing = jnp.logical_or(jnp.isnan(x), jnp.isinf(x))
    m = missing.astype(jnp.float32)
    w = wt_ref[...]
    if use_bf16:
        # m is exactly {0,1} -> lossless; W rounds to bf16 (gated by caller).
        m = m.astype(jnp.bfloat16)
        w = w.astype(jnp.bfloat16)
    imput = lax.dot_general(
        m, w,
        dimension_numbers=(((1,), (0,)), ((), ())),       # m @ W.T, no transpose
        preferred_element_type=jnp.float32)
    col = pl.multiple_of(j * tn, 128)
    xj = x_ref[:, pl.ds(col, tn)]                         # columns of this N tile
    yj = jnp.where(jnp.logical_or(jnp.isnan(xj), jnp.isinf(xj)),
                   jnp.zeros_like(xj), xj)
    o_ref[...] = yj + imput


# ---------------------------------------------------------------------------
# Wrappers
# ---------------------------------------------------------------------------

def _diag_forward(x, diag, b, f, budget):
    # Always present a lane-dense (multiple-of-128 last dim) layout.
    if f % 128 == 0:
        lanes = f
        x2 = x
        d2 = diag.reshape(1, f)
        unview = lambda o: o
    elif f <= 128 and 128 % f == 0 and (b * f) % 128 == 0:
        lanes = 128
        x2 = x.reshape(-1, lanes)                         # contiguous view, free
        d2 = jnp.tile(diag, lanes // f).reshape(1, lanes) # F-periodic diagonal
        unview = lambda o: o.reshape(b, f)
    else:
        lanes = _round_up(f, 128)                         # zero-pad feature dim
        x2 = jnp.pad(x, ((0, 0), (0, lanes - f)))
        d2 = jnp.pad(diag, (0, lanes - f)).reshape(1, lanes)
        unview = lambda o: o[:, :f]

    rows = x2.shape[0]
    row_bytes = lanes * 4
    tb = _pick_batch_tile(rows, row_bytes, row_bytes, budget)

    out = pl.pallas_call(
        _diag_kernel,
        out_shape=jax.ShapeDtypeStruct((rows, lanes), jnp.float32),
        grid=(pl.cdiv(rows, tb),),
        in_specs=[
            pl.BlockSpec((tb, lanes), lambda i: (i, 0)),
            pl.BlockSpec((1, lanes), lambda i: (0, 0)),   # resident diagonal
        ],
        out_specs=pl.BlockSpec((tb, lanes), lambda i: (i, 0)),
        compiler_params=pltpu.CompilerParams(
            dimension_semantics=("parallel",),
            vmem_limit_bytes=int(budget + (8 << 20))),
    )(x2, d2)
    return unview(out)


def _general_forward(x, weight, b, f, budget, use_bf16_matmul):
    f_pad = _round_up(f, 128)
    w_t = weight.T                       # one-time HBM-side transpose (amortized)
    if f_pad != f:
        x = jnp.pad(x, ((0, 0), (0, f_pad - f)))
        w_t = jnp.pad(w_t, ((0, f_pad - f), (0, f_pad - f)))

    # Tile output features so the resident W.T block fits the VMEM budget.
    tn = _pick_n_tile(f_pad, budget // 2)
    weight_bytes = 2 * f_pad * tn * 4                       # double-buffered
    streaming_budget = max(budget - weight_bytes, budget // 4)
    tb = _pick_batch_tile(b, f_pad * 4, tn * 4, streaming_budget)

    usage = weight_bytes + 2 * tb * (f_pad + tn) * 4
    vmem_limit = int(min(max(usage + usage // 4 + (1 << 20), 32 << 20),
                         budget + (8 << 20)))

    kernel = functools.partial(_general_kernel, tn=tn, use_bf16=use_bf16_matmul)
    out = pl.pallas_call(
        kernel,
        out_shape=jax.ShapeDtypeStruct((b, f_pad), jnp.float32),
        grid=(pl.cdiv(b, tb), pl.cdiv(f_pad, tn)),
        in_specs=[
            pl.BlockSpec((tb, f_pad), lambda i, j: (i, 0)),
            pl.BlockSpec((f_pad, tn), lambda i, j: (0, j)),   # W.T feature tile
        ],
        out_specs=pl.BlockSpec((tb, tn), lambda i, j: (i, j)),
        compiler_params=pltpu.CompilerParams(
            dimension_semantics=("parallel", "parallel"),
            vmem_limit_bytes=vmem_limit),
    )(x, w_t)
    return out[:, :f] if f_pad != f else out


def bad_feature_embedding(x, weight, force_diagonal=True, use_bf16_matmul=False):
    """Pallas implementation of BadFeatureEmbeddingNet.forward.

    Args:
        x: (batch, n_features) float32 input (may contain nan/inf).
        weight: (n_features, n_features) float32 linear weight
            (torch layout: linear(z) = z @ weight.T, no bias).
        force_diagonal: keep only the diagonal of the weight (as in the module).
        use_bf16_matmul: optionally run the general-path matmul in bf16
            (exact for the {0,1} mask, rounds W; keeps f32 accumulation).

    Returns:
        (batch, n_features) float32 output.
    """
    b, f = x.shape
    assert weight.shape == (f, f)
    x = x.astype(jnp.float32)
    weight = weight.astype(jnp.float32)
    budget = _vmem_budget_bytes()

    if force_diagonal:
        # TODO(synk): the in-place `weight.data *= mask` training side effect is
        # modeled functionally by consuming only diag(W).
        return _diag_forward(x, jnp.diagonal(weight), b, f, budget)
    return _general_forward(x, weight, b, f, budget, use_bf16_matmul)


# ---------------------------------------------------------------------------
# Pure-JAX reference (mirrors the PyTorch forward)
# ---------------------------------------------------------------------------

def _reference(x, weight, force_diagonal=True):
    if force_diagonal:
        weight = weight * jnp.eye(weight.shape[0], dtype=weight.dtype)
    missing = jnp.logical_or(jnp.isnan(x), jnp.isinf(x))
    m = missing.astype(jnp.float32)
    y = jnp.where(missing, 0.0, x)
    return y + m @ weight.T


def _check_case(key, batch, n_features, bad_entries):
    kx, kw = jax.random.split(key)
    x = jax.random.normal(kx, (batch, n_features), dtype=jnp.float32)
    for (i, j), val in bad_entries:
        x = x.at[i, j].set(val)
    bound = 1.0 / (n_features ** 0.5)
    weight = jax.random.uniform(kw, (n_features, n_features), dtype=jnp.float32,
                                minval=-bound, maxval=bound)

    # force_diagonal=True -> elementwise (no-matmul) lane-dense kernel.
    out = jax.block_until_ready(bad_feature_embedding(x, weight, True))
    ref = _reference(x, weight, True)
    assert out.shape == (batch, n_features)
    assert jnp.allclose(out, ref, atol=1e-5, rtol=1e-5), "diag path mismatch"
    assert not jnp.any(jnp.isnan(out)) and not jnp.any(jnp.isinf(out))

    # force_diagonal=False -> MXU kernel (pre-transposed weight, padded lanes).
    out_g = jax.block_until_ready(bad_feature_embedding(x, weight, False))
    ref_g = _reference(x, weight, False)
    assert out_g.shape == (batch, n_features)
    assert jnp.allclose(out_g, ref_g, atol=1e-5, rtol=1e-5), "general path mismatch"
    assert not jnp.any(jnp.isnan(out_g)) and not jnp.any(jnp.isinf(out_g))


if __name__ == "__main__":
    key = jax.random.PRNGKey(0)
    k1, k2 = jax.random.split(key)

    # Case 1: F divides 128 -> lane-dense reshape path.
    _check_case(
        k1, batch=8, n_features=16,
        bad_entries=[((0, 3), jnp.nan), ((1, 7), jnp.inf),
                     ((2, 0), -jnp.inf), ((5, 15), jnp.nan)])

    # Case 2: awkward F (20) -> zero-pad-to-128 path on both kernels.
    _check_case(
        k2, batch=6, n_features=20,
        bad_entries=[((0, 19), jnp.nan), ((3, 2), jnp.inf), ((5, 10), -jnp.inf)])

    print("KERNEL_OK")
</pallas_src>

<mosaic_0001>
module attributes {stable_mosaic.version = 11 : i64} {
  func.func @_diag_kernel(%arg0: i32, %arg1: memref<1x128xf32, #tpu.memory_space<vmem>>, %arg2: memref<1x128xf32, #tpu.memory_space<vmem>>, %arg3: memref<1x128xf32, #tpu.memory_space<vmem>>) attributes {dimension_semantics = [#tpu.dimension_semantics<parallel>], iteration_bounds = array<i64: 1>, scalar_prefetch = 0 : i64, scratch_operands = 0 : i64, tpu.core_type = #tpu.core_type<tc>, window_params = [{transform_indices = @transform_0, window_bounds = array<i64: 1, 128>}, {pipeline_mode = #tpu.pipeline_mode<synchronous>, transform_indices = @transform_1, window_bounds = array<i64: 1, 128>}, {transform_indices = @transform_2, window_bounds = array<i64: 1, 128>}]} {
    %c0 = arith.constant 0 : index
    %c0_0 = arith.constant 0 : index
    %0 = vector.load %arg1[%c0, %c0_0] : memref<1x128xf32, #tpu.memory_space<vmem>>, vector<1x128xf32>
    %1 = arith.cmpf one, %0, %0 : vector<1x128xf32>
    %2 = math.absf %0 : vector<1x128xf32>
    %cst = arith.constant 0x7F800000 : f32
    %3 = vector.broadcast %cst : f32 to vector<1x128xf32>
    %4 = arith.cmpf oeq, %2, %3 : vector<1x128xf32>
    %5 = arith.ori %1, %4 : vector<1x128xi1>
    %c0_1 = arith.constant 0 : index
    %c0_2 = arith.constant 0 : index
    %6 = vector.load %arg2[%c0_1, %c0_2] : memref<1x128xf32, #tpu.memory_space<vmem>>, vector<1x128xf32>
    %7 = arith.select %5, %6, %0 : vector<1x128xi1>, vector<1x128xf32>
    %c0_3 = arith.constant 0 : index
    %c0_4 = arith.constant 0 : index
    %8 = vector.load %arg3[%c0_3, %c0_4] : memref<1x128xf32, #tpu.memory_space<vmem>>, vector<1x128xf32>
    tpu.vector_store %arg3[%c0_3, %c0_4], %7 {strides = array<i32>} : memref<1x128xf32, #tpu.memory_space<vmem>>, vector<1x128xf32>,
    return
  }
  func.func @transform_0(%arg0: i32) -> (i32, i32) {
    %c0_i32 = arith.constant 0 : i32
    %c0_i32_0 = arith.constant 0 : i32
    return %arg0, %c0_i32 : i32, i32
  }
  func.func @transform_1(%arg0: i32) -> (i32, i32) {
    %c0_i32 = arith.constant 0 : i32
    %c0_i32_0 = arith.constant 0 : i32
    %c0_i32_1 = arith.constant 0 : i32
    return %c0_i32, %c0_i32_0 : i32, i32
  }
  func.func @transform_2(%arg0: i32) -> (i32, i32) {
    %c0_i32 = arith.constant 0 : i32
    %c0_i32_0 = arith.constant 0 : i32
    return %arg0, %c0_i32 : i32, i32
  }
}

</mosaic_0001>

<bundles_post_ra>
// kernel: tpu_custom_call.1
= control target key start
LH: loop header
LB: loop body
LE: loop exit
PB: predicated region body
PF: predicated region fallthrough
CT: control target
= control target key end

     0   :  { %7 = vsyncpa [#allocation3], 0  ;;  %s174_s0 = inlined_call_operand.hbm [shape: f32[1,128], index: 0, kind: input, shape index: {}]   ;;  %s175_s1 = inlined_call_operand.hbm [shape: f32[1,128], index: 1, kind: input, shape index: {}]   ;;  %s176_s2 = inlined_call_operand.hbm [shape: f32[1,128], index: 2, kind: output, shape index: {}]  }
   0x1   :  { %8 = vsyncpa [#allocation6], 0 }
   0x2   :  { %9 = vsyncpa [#allocation4], 0  ;;  %s15_s11 = sshll.u32 %s174_s0, 4  ;;  %s147_s12 = smov [#allocation2]   ;;  %s16_s11 = int_to_ptr.hbm [resolvable:$true] %s15_s11 }
   0x3   :  { %s17_s13 = sshll.u32 %s147_s12, 4  ;;  %s26_s16 = sshll.u32 %s175_s1, 4  ;;  %s18_s13 = int_to_ptr.vmem [resolvable:$true] %s17_s13  ;;  %s27_s16 = int_to_ptr.hbm [resolvable:$true] %s26_s16 }
   0x4   :  { %20 = dma.hbm_to_vmem [thread:$0]  %s16_s11, 16, %s18_s13, [#allocation3]  }
   0x5   :  { %s148_s17 = smov [#allocation5]  }
   0x6   :  { %s28_s18 = sshll.u32 %s148_s17, 4  ;;  %s29_s18 = int_to_ptr.vmem [resolvable:$true] %s28_s18 }
   0x7   :  { %31 = dma.hbm_to_vmem [thread:$0]  %s27_s16, 16, %s29_s18, [#allocation6]  }
   0x8   :  { %141 = dma.done.wait [#allocation3], 16  }
   0x9   :  { %142 = vsyncadd [#allocation3], 4294967280 }
   0xa   :  { %143 = dma.done.wait [#allocation6], 16  }
   0xb   :  { %144 = vsyncadd [#allocation6], 4294967280  ;;  %v40_v0 = vld [vmem:[#allocation2] sm:$0x1]  ;;  %s149_s0 = smov [#allocation7]   ;;  %s55_s22 = sshll.u32 %s176_s2, 4  ;;  %s56_s22 = int_to_ptr.hbm [resolvable:$true] %s55_s22 }
   0xc   :  { %vm41_vm0 = vcmp.ne.f32.partialorder %v40_v0, %v40_v0  ;;  %v42_v1 = vand.u32 2147483647, %v40_v0  ;;  %s53_s19 = sshll.u32 %s149_s0, 4  ;;  %v45_v2 = vld [vmem:[#allocation5] sm:$0x1]  ;;  %s54_s19 = int_to_ptr.vmem [resolvable:$true] %s53_s19 }
   0xe   :  { %vm43_vm1 = vcmp.eq.f32.partialorder %v42_v1, inf }
   0xf   :  { %vm44_vm2 = vmor %vm41_vm0, %vm43_vm1 }
  0x10   :  { %v46_v3 = vsel %vm44_vm2, %v45_v2, %v40_v0 }
  0x11   :  { %47 = vst [vmem:[#allocation7] sm:$0x1] %v46_v3 }
  0x12   :  { %58 = dma.vmem_to_hbm [thread:$0]  %s54_s19, 16, %s56_s22, [#allocation4]  }
  0x13   :  { %145 = dma.done.wait [#allocation4], 16  }
  0x14   :  { %146 = vsyncadd [#allocation4], 4294967280 }
  0x15   :  { %63 = vsyncpa [#allocation3], 1 }
  0x16   :  { %64 = vsyncpa [#allocation6], 1 }
  0x17   :  { %65 = vsyncpa [#allocation4], 1 }

</bundles_post_ra>
